<compile_context>
chip_gen: v7x
topology: tpu7x:2x2x1
jax: 0.10.0
libtpu: 0.0.40
codegen_flags: <defaults>
</compile_context>

<pallas_src>
import functools

import jax
import jax.numpy as jnp
from jax import lax
from jax.experimental import pallas as pl
from jax.experimental.pallas import tpu as pltpu


def _round_up(x, n):
    return ((x + n - 1) // n) * n


def _gram_kernel(f_ref, g_ref, acc_ref, *, shift, inv_scale, m_valid, tk, n_k,
                 needs_mask):
    # f_ref:  (n_filter, tk) tile of (possibly zero-padded) F0
    # g_ref:  (n_filter, n_filter) partial-Gram output block for this split
    # acc_ref: (n_filter, n_filter) float32 accumulator, resident across k
    c = pl.program_id(0)   # split (TensorCore shard) index
    k = pl.program_id(1)   # reduction step within the split

    @pl.when(k == 0)
    def _():
        acc_ref[...] = jnp.zeros_like(acc_ref)

    # Apply the activation shift in the input's native dtype (weak Python float
    # keeps bf16 inputs bf16 -> native MXU cadence; f32 stays f32).
    f = f_ref[...] + shift
    if needs_mask:
        # Zero out padded columns so they do not contribute shift^2 terms.
        col0 = (c * n_k + k) * tk
        col_ids = col0 + lax.broadcasted_iota(jnp.int32, f_ref.shape, 1)
        f = jnp.where(col_ids < m_valid, f, jnp.zeros_like(f))

    # F_tile @ F_tile^T without an explicit transpose: contract dim 1 of both.
    acc_ref[...] += lax.dot_general(
        f, f,
        dimension_numbers=(((1,), (1,)), ((), ())),
        preferred_element_type=jnp.float32,
    )

    @pl.when(k == n_k - 1)
    def _():
        g_ref[...] = (acc_ref[...] * inv_scale).astype(g_ref.dtype)


def _select_tiling(n_filter, m, itemsize):
    """Pick (tk, num_splits): reduction tile and TensorCore-split count."""
    # Budget ~16 MiB for the double-buffered input tile: big enough to sit at
    # the HBM roofline, small enough to fit v7x's 64 MiB physical VMEM together
    # with the f32 temp, accumulator and output buffers.
    input_budget = 16 * 1024 * 1024
    tk_cap = (input_budget // (2 * n_filter * itemsize)) // 128 * 128
    tk_cap = max(128, min(2048, tk_cap))

    if m <= tk_cap:
        # Whole reduction fits in one lane-aligned tile.
        return _round_up(m, 128), 1
    # Prefer a tile that splits m into an even number of blocks: no padding and
    # the two halves can run on the two v7x TensorCores.
    for tk in range(tk_cap, 127, -128):
        if m % (2 * tk) == 0:
            return tk, 2
    # Next best: exact divisor (odd block count) -> single split, no padding.
    for tk in range(tk_cap, 127, -128):
        if m % tk == 0:
            return tk, 1
    # Otherwise pad the tail (masked in-kernel) and keep the 2-way split.
    return min(tk_cap, 1024), 2


def gramian_matrix(source, activation_shift):
    """source: (1, n_filter, h, w). Returns (n_filter, n_filter) float32."""
    one, n_filter, h, w = source.shape
    assert one == 1
    m = h * w
    f0 = source.reshape(n_filter, m)  # matches torch .view(n_filter, m)
    itemsize = jnp.dtype(f0.dtype).itemsize

    tk, num_splits = _select_tiling(n_filter, m, itemsize)
    m_pad = _round_up(m, tk * num_splits)
    if m_pad != m:
        f0 = jnp.pad(f0, ((0, 0), (0, m_pad - m)))
    needs_mask = m_pad != m
    n_k = m_pad // (tk * num_splits)  # reduction steps per split

    kernel = functools.partial(
        _gram_kernel,
        shift=float(activation_shift),
        inv_scale=1.0 / float(n_filter * m),
        m_valid=m,
        tk=tk,
        n_k=n_k,
        needs_mask=needs_mask,
    )

    # VMEM: double-buffered input tile + shifted temp + f32 accumulator +
    # double-buffered output block, with headroom. Never below the default
    # scoped limit, never above v7x physical capacity.
    vmem_limit = (
        2 * n_filter * tk * itemsize      # double-buffered input tile
        + 2 * n_filter * tk * 4           # shifted / masked f32 temp (generous)
        + 3 * n_filter * n_filter * 4     # accumulator + output buffers
        + (4 << 20)                       # slack for internal scratch
    )
    vmem_limit = int(min(max(vmem_limit, 32 * 1024 * 1024), 64 * 1024 * 1024))

    cost = pl.CostEstimate(
        flops=2 * n_filter * n_filter * m_pad,
        transcendentals=0,
        bytes_accessed=n_filter * m_pad * itemsize
        + num_splits * n_filter * n_filter * 4,
    )

    g_parts = pl.pallas_call(
        kernel,
        out_shape=jax.ShapeDtypeStruct((num_splits, n_filter, n_filter),
                                       jnp.float32),
        grid_spec=pltpu.PrefetchScalarGridSpec(
            num_scalar_prefetch=0,
            grid=(num_splits, n_k),
            in_specs=[
                pl.BlockSpec((n_filter, tk), lambda c, k: (0, c * n_k + k)),
            ],
            out_specs=pl.BlockSpec((None, n_filter, n_filter),
                                   lambda c, k: (c, 0, 0)),
            scratch_shapes=[pltpu.VMEM((n_filter, n_filter), jnp.float32)],
        ),
        compiler_params=pltpu.CompilerParams(
            dimension_semantics=("parallel", "arbitrary"),
            vmem_limit_bytes=vmem_limit,
        ),
        cost_estimate=cost,
    )(f0)

    if num_splits == 1:
        return g_parts[0]
    # Scale is linear, so summing the pre-scaled per-core partials is exact.
    return jnp.sum(g_parts, axis=0)


def gramian_matrix_ref(source, activation_shift):
    one, n_filter, h, w = source.shape
    m = h * w
    f = source.reshape(n_filter, m).astype(jnp.float32) + activation_shift
    return (f @ f.T) / (n_filter * m)


def _check(n_filter, h, w, activation_shift, key):
    x = jax.random.normal(key, (1, n_filter, h, w), dtype=jnp.float32)
    g = jax.block_until_ready(gramian_matrix(x, activation_shift))
    g_ref = gramian_matrix_ref(x, activation_shift)
    assert g.shape == (n_filter, n_filter)
    assert jnp.allclose(g, g_ref, atol=1e-5, rtol=1e-5), (n_filter, h, w)


if __name__ == "__main__":
    key = jax.random.PRNGKey(0)
    k0, k1, k2 = jax.random.split(key, 3)

    # Primary small example consistent with the module: (1, 4, 16, 16).
    _check(n_filter=4, h=16, w=16, activation_shift=-1.0, key=k0)
    # Non-divisible spatial size: exercises the zero-pad + in-kernel mask path.
    _check(n_filter=8, h=23, w=23, activation_shift=0.5, key=k1)
    # m > tile cap: exercises the 2-way (dual-TensorCore) reduction split.
    _check(n_filter=8, h=48, w=48, activation_shift=-1.0, key=k2)

    print("KERNEL_OK")
</pallas_src>

<mosaic_0001>
module attributes {stable_mosaic.version = 11 : i64} {
  func.func @_gram_kernel(%arg0: i32, %arg1: i32, %arg2: memref<4x256xf32, #tpu.memory_space<vmem>>, %arg3: memref<1x4x4xf32, #tpu.memory_space<vmem>>, %arg4: memref<4x4xf32, #tpu.memory_space<vmem>>) attributes {dimension_semantics = [#tpu.dimension_semantics<parallel>, #tpu.dimension_semantics<arbitrary>], iteration_bounds = array<i64: 1, 1>, scalar_prefetch = 0 : i64, scratch_operands = 1 : i64, tpu.core_type = #tpu.core_type<tc>, window_params = [{transform_indices = @transform_0, window_bounds = array<i64: 4, 256>}, {transform_indices = @transform_1, window_bounds = array<i64: 1, 4, 4>}]} {
    %c0_i32 = arith.constant 0 : i32
    %0 = arith.cmpi eq, %arg1, %c0_i32 : i32
    %1 = arith.extui %0 : i1 to i32
    %c0_i32_0 = arith.constant 0 : i32
    %2 = arith.cmpi ne, %1, %c0_i32_0 : i32
    scf.if %2 {
      %cst_9 = arith.constant 0.000000e+00 : f32
      %13 = vector.broadcast %cst_9 : f32 to vector<4x4xf32>
      %c0_10 = arith.constant 0 : index
      %c0_11 = arith.constant 0 : index
      %14 = vector.load %arg4[%c0_10, %c0_11] : memref<4x4xf32, #tpu.memory_space<vmem>>, vector<4x4xf32>
      tpu.vector_store %arg4[%c0_10, %c0_11], %13 {strides = array<i32>} : memref<4x4xf32, #tpu.memory_space<vmem>>, vector<4x4xf32>,
    } else {
    }
    %c0 = arith.constant 0 : index
    %c0_1 = arith.constant 0 : index
    %3 = vector.load %arg2[%c0, %c0_1] : memref<4x256xf32, #tpu.memory_space<vmem>>, vector<4x256xf32>
    %cst = arith.constant -1.000000e+00 : f32
    %4 = vector.broadcast %cst : f32 to vector<4x256xf32>
    %5 = arith.addf %3, %4 : vector<4x256xf32>
    %c0_2 = arith.constant 0 : index
    %c0_3 = arith.constant 0 : index
    %6 = vector.load %arg4[%c0_2, %c0_3] : memref<4x4xf32, #tpu.memory_space<vmem>>, vector<4x4xf32>
    %cst_4 = arith.constant dense<0.000000e+00> : vector<4x4xf32>
    %7 = tpu.matmul %5, %5, %cst_4 {dimension_numbers = #tpu.dot_dimension_numbers<[1], [1], [0], [0], [0, 0, 1, 0], [], []>} : vector<4x256xf32>, vector<4x256xf32>, vector<4x4xf32> -> vector<4x4xf32>
    %8 = arith.addf %6, %7 : vector<4x4xf32>
    %c0_5 = arith.constant 0 : index
    %c0_6 = arith.constant 0 : index
    %9 = vector.load %arg4[%c0_5, %c0_6] : memref<4x4xf32, #tpu.memory_space<vmem>>, vector<4x4xf32>
    tpu.vector_store %arg4[%c0_5, %c0_6], %8 {strides = array<i32>} : memref<4x4xf32, #tpu.memory_space<vmem>>, vector<4x4xf32>,
    %c0_i32_7 = arith.constant 0 : i32
    %10 = arith.cmpi eq, %arg1, %c0_i32_7 : i32
    %11 = arith.extui %10 : i1 to i32
    %c0_i32_8 = arith.constant 0 : i32
    %12 = arith.cmpi ne, %11, %c0_i32_8 : i32
    scf.if %12 {
      %c0_9 = arith.constant 0 : index
      %c0_10 = arith.constant 0 : index
      %13 = vector.load %arg4[%c0_9, %c0_10] : memref<4x4xf32, #tpu.memory_space<vmem>>, vector<4x4xf32>
      %cst_11 = arith.constant 9.765625E-4 : f32
      %14 = vector.broadcast %cst_11 : f32 to vector<4x4xf32>
      %15 = arith.mulf %13, %14 : vector<4x4xf32>
      %c0_12 = arith.constant 0 : index
      %c0_13 = arith.constant 0 : index
      %c0_14 = arith.constant 0 : index
      %16 = vector.load %arg3[%c0_12, %c0_13, %c0_14] : memref<1x4x4xf32, #tpu.memory_space<vmem>>, vector<1x4x4xf32>
      %17 = vector.shape_cast %16 : vector<1x4x4xf32> to vector<4x4xf32>
      %18 = vector.shape_cast %15 : vector<4x4xf32> to vector<1x4x4xf32>
      tpu.vector_store %arg3[%c0_12, %c0_13, %c0_14], %18 {strides = array<i32>} : memref<1x4x4xf32, #tpu.memory_space<vmem>>, vector<1x4x4xf32>,
    } else {
    }
    return
  }
  func.func @transform_0(%arg0: i32, %arg1: i32) -> (i32, i32) {
    %c1_i32 = arith.constant 1 : i32
    %0 = arith.muli %arg0, %c1_i32 : i32
    %1 = arith.addi %0, %arg1 : i32
    %c0_i32 = arith.constant 0 : i32
    %c0_i32_0 = arith.constant 0 : i32
    return %c0_i32, %1 : i32, i32
  }
  func.func @transform_1(%arg0: i32, %arg1: i32) -> (i32, i32, i32) {
    %c0_i32 = arith.constant 0 : i32
    %c0_i32_0 = arith.constant 0 : i32
    %c0_i32_1 = arith.constant 0 : i32
    return %arg0, %c0_i32, %c0_i32_0 : i32, i32, i32
  }
}

</mosaic_0001>

<bundles_post_ra>
// kernel: tpu_custom_call.1
= control target key start
LH: loop header
LB: loop body
LE: loop exit
PB: predicated region body
PF: predicated region fallthrough
CT: control target
= control target key end

     0   :  { %6 = vsyncpa [#allocation4], 0  ;;  %s224_s0 = inlined_call_operand.hbm [shape: f32[4,256], index: 0, kind: input, shape index: {}]   ;;  %s225_s1 = inlined_call_operand.hbm [shape: f32[1,4,4], index: 1, kind: output, shape index: {}]  }
   0x1   :  { %7 = vsyncpa [#allocation5], 0  ;;  %s184_s6 = smov [#allocation3]   ;;  %s136_s10 = scalar_lea.hbm %s224_s0, 128 }
   0x2   :  { %s18_s7 = sshll.u32 %s184_s6, 4  ;;  %p137_p0 = scmp.ne.s32.totalorder %s224_s0, %s136_s10  ;;  %s19_s7 = int_to_ptr.vmem [resolvable:$true] %s18_s7 }
   0x3   :  { %p140_p1 = scmp.lt.u32.totalorder %s136_s10, %s224_s0 }
   0x5   :  { %p142_p2 = pnand %p140_p1, %p137_p0 }
   0x7   :  { %145 = shalt.err (!%p142_p2)
}
   0x8   :  { %s146_s15 = scalar_lea.vmem %s19_s7, 128  ;;  %p151_p4 = scmp.lt.s32.totalorder %s19_s7, %s19_s7 }
   0x9   :  { %p147_p3 = scmp.ne.s32.totalorder %s19_s7, %s146_s15  ;;  %p152_p5 = scmp.lt.s32.totalorder %s146_s15, %s146_s15 }
   0xb   :  { %p153_p6 = por %p152_p5, %p151_p4 }
   0xd   :  { %p154_p7 = pnand %p153_p6, %p147_p3 }
   0xf   :  { %157 = shalt.err (!%p154_p7)
}
  0x10   :  { %21 = dma.hbm_to_vmem [thread:$0]  %s224_s0, 128, %s19_s7, [#allocation4]  }
  0x11   :  { %180 = dma.done.wait [#allocation4], 128  }
  0x12   :  { %181 = vsyncadd [#allocation4], 4294967168  ;;  %vm31_vm0 = vcmask 27648   ;;  %v185_v0 = vmov 0.0   ;;  %v33_v1 = vld [vmem:[#allocation3] sm:$0xff]  ;;  %s186_s0 = smov [#allocation6]  }
  0x13   :  { %32 = vst.msk [vmem:[#allocation2] sm:$0xf] %vm31_vm0, %v185_v0  ;;  %v34_v2 = vadd.f32 -1.0, %v33_v1  ;;  %s124_s18 = sshll.u32 %s186_s0, 4  ;;  %s125_s18 = int_to_ptr.vmem [resolvable:$true] %s124_s18 }
  0x14   :  { %s158_s19 = scalar_lea.vmem %s125_s18, 64  ;;  %p163_p9 = scmp.lt.s32.totalorder %s125_s18, %s125_s18 }
  0x15   :  { %v37_v3 = vcombine.high %v34_v2, %v34_v2  ;;  %p159_p8 = scmp.ne.s32.totalorder %s125_s18, %s158_s19  ;;  %p164_p10 = scmp.lt.s32.totalorder %s158_s19, %s158_s19 }
  0x17   :  { %39 = vmatprep.subr.mxu0 %v37_v3  ;;  %103 = vmatprep.mubr.f32.mxu0 %v37_v3  ;;  %p165_p11 = por %p164_p10, %p163_p9 }
  0x18   :  { %40 = vmatpush1.xpose.msra.mxu0 %v34_v2 }
  0x19   :  { %p166_p12 = pnand %p165_p11, %p159_p8 }
  0x1a   :  { %v35_v4 = vld [vmem:[#allocation2] sm:$0xf] }
  0x1b   :  { %104 = vmatmul.mubr.f32.vlgmr.msra.gmra.mrb[0].mxu0 %v34_v2 }
  0xee   :  { %v105_v5 = vpop.f32.mrb[0].mxu0 }
  0xef   :  { %v109_v6 = vadd.f32 %v105_v5, %v35_v4  ;;  %v107_v7 = vpop.f32.mrb[1].mxu0 }
  0xf1   :  { %111 = vst.msk [vmem:[#allocation2] sm:$0xf] %vm31_vm0, %v109_v6 }
  0xf8   :  { %v115_v8 = vld [vmem:[#allocation2] sm:$0xf] }
  0xf9   :  { %v116_v9 = vmul.f32 0.0009765625, %v115_v8 }
  0xfb   :  { %117 = vst.msk [vmem:[#allocation6] sm:$0xf] %vm31_vm0, %v116_v9 }
  0xfc   :  { %169 = shalt.err (!%p166_p12)
}
  0xfd   :  { %s170_s22 = scalar_lea.hbm %s225_s1, 64 }
  0xfe   :  { %p171_p13 = scmp.ne.s32.totalorder %s225_s1, %s170_s22  ;;  %p174_p0 = scmp.lt.u32.totalorder %s170_s22, %s225_s1 }
 0x100   :  { %p176_p1 = pnand %p174_p0, %p171_p13 }
 0x102   :  { %179 = shalt.err (!%p176_p1)
}
 0x103   :  { %127 = dma.vmem_to_hbm [thread:$0]  %s125_s18, 64, %s225_s1, [#allocation5]  }
 0x104   :  { %182 = dma.done.wait [#allocation5], 64  }
 0x105   :  { %183 = vsyncadd [#allocation5], 4294967232 }
 0x106   :  { %131 = vsyncpa [#allocation4], 1 }
 0x107   :  { %132 = vsyncpa [#allocation5], 1 }

</bundles_post_ra>
